<compile_context>
chip_gen: v7x
topology: tpu7x:2x2x1
jax: 0.10.0
libtpu: 0.0.40
codegen_flags: <defaults>
</compile_context>

<pallas_src>
import functools

import numpy as np

import jax
import jax.numpy as jnp
from jax.experimental import pallas as pl
from jax.experimental.pallas import tpu as pltpu


def _hyptube_kernel(x_ref, we_ref, be_ref, wd_ref, bd_ref, o_ref, *, chain_dtype):
    # x_ref : (1, cin, tile)       pixel slab for one batch element
    # we_ref: (6*hc_pad, cin)      packed encoder weight, rows [u, v, a0, m0, a1, m1]
    # be_ref: (6*hc_pad, 1)        packed encoder bias, same ordering
    # wd_ref: (cout, hc_pad)       packed decoder weight (zero in padded columns)
    # bd_ref: (cout, 1)            decoder bias
    # o_ref : (1, cout, tile)
    hc_pad = we_ref.shape[0] // 6
    x = x_ref[0]                                             # (cin, tile)

    # One fused encoder matmul (MXU), f32 accumulation.
    flow = jnp.dot(we_ref[...], x, preferred_element_type=jnp.float32)
    flow = flow + be_ref[...]                                # (6*hc_pad, tile)
    flow = flow.astype(chain_dtype)

    # hc_pad is a multiple of 8 (16 for bf16 chains): sublane-aligned slices.
    u = flow[0 * hc_pad:1 * hc_pad]
    v = flow[1 * hc_pad:2 * hc_pad]
    a0 = flow[2 * hc_pad:3 * hc_pad]
    m0 = flow[3 * hc_pad:4 * hc_pad]
    a1 = flow[4 * hc_pad:5 * hc_pad]
    m1 = flow[5 * hc_pad:6 * hc_pad]

    one = jnp.asarray(1.0, chain_dtype)
    out = (a0 * u) * (one + m0 * v)                          # ix = 0 (initial out is 0)
    out = (out + a1 * u) * (one + m1 * v)                    # ix = 1

    # Decoder matmul (MXU), f32 accumulation. Padded hc rows are zeroed in wd.
    y = jnp.dot(wd_ref[...], out.astype(wd_ref.dtype),
                preferred_element_type=jnp.float32)
    y = y + bd_ref[...]                                      # (cout, tile)
    o_ref[0] = y.astype(o_ref.dtype)


def pack_hyptube_params(w_enc, b_enc, w_dec, b_dec, hidden, *,
                        chain_dtype=jnp.float32, param_dtype=jnp.float32):
    """One-time parameter packing (hoisted out of the per-call launch path).

    w_enc: (6*hc, cin) torch Linear layout, b_enc: (6*hc,),
    w_dec: (cout, hc), b_dec: (cout,).
    Reorders encoder rows so the six logical chunks (u, v, a0, m0, a1, m1) are
    contiguous, and pads each chunk to hc_pad rows (sublane aligned) so the
    in-kernel slices never cross an (8,128) tile boundary.
    """
    hc = hidden
    cin = w_enc.shape[1]
    cout = w_dec.shape[0]

    # Sublane alignment: 8 rows for f32 chains, 16 for 16-bit chains.
    align = 16 if jnp.dtype(chain_dtype).itemsize == 2 else 8
    hc_pad = max(align, ((hc + align - 1) // align) * align)

    # Source channel of chunk element k:
    #   u: k, v: hc+k, a0: 2hc+4k, m0: 2hc+4k+1, a1: 2hc+4k+2, m1: 2hc+4k+3
    # (matches flow.view(-1, hc, 2, 2, w, h) with aparam=j0, mparam=j1).
    k = np.arange(hc)
    chunk_src = [k, hc + k,
                 2 * hc + 4 * k, 2 * hc + 4 * k + 1,
                 2 * hc + 4 * k + 2, 2 * hc + 4 * k + 3]

    w_enc = jnp.asarray(w_enc, param_dtype)
    b_enc = jnp.asarray(b_enc, param_dtype)
    we = jnp.zeros((6 * hc_pad, cin), param_dtype)
    be = jnp.zeros((6 * hc_pad, 1), param_dtype)
    for g, src in enumerate(chunk_src):
        we = we.at[g * hc_pad:g * hc_pad + hc].set(w_enc[src])
        be = be.at[g * hc_pad:g * hc_pad + hc, 0].set(b_enc[src])

    wd = jnp.zeros((cout, hc_pad), param_dtype).at[:, :hc].set(
        jnp.asarray(w_dec, param_dtype))
    bd = jnp.asarray(b_dec, param_dtype).reshape(cout, 1)

    return dict(we=we, be=be, wd=wd, bd=bd,
                hc=hc, hc_pad=hc_pad, chain_dtype=chain_dtype)


def hyptube_forward(x_nchw, packed, *, tn=65536, vmem_budget_bytes=24 << 20):
    """x_nchw: (b, cin, w, h). `packed` from pack_hyptube_params()."""
    b, cin, w, h = x_nchw.shape
    we, be, wd, bd = packed["we"], packed["be"], packed["wd"], packed["bd"]
    hc_pad = packed["hc_pad"]
    chain_dtype = packed["chain_dtype"]
    cout = wd.shape[0]
    n_sp = w * h
    itemsize = jnp.dtype(x_nchw.dtype).itemsize
    chain_itemsize = jnp.dtype(chain_dtype).itemsize

    # --- Lane-dense pixel tile sizing -------------------------------------
    # Caller cap rounded DOWN to a multiple of 128 (never emit masked stores /
    # non-(8,128)-divisible blocks because of a stray tn).
    tn = max(128, (int(tn) // 128) * 128)
    # Per-pixel VMEM footprint: double-buffered in/out blocks + f32 flow
    # accumulator + chain temporaries.  Keeps the tile inside the budget on
    # every generation (v5e 16 MiB default scoped, v6e 32/128, v7x 32/64).
    bytes_per_px = (2 * (cin + cout) * itemsize
                    + 6 * hc_pad * 4
                    + 6 * hc_pad * chain_itemsize)
    budget_tile = max(128, (int(vmem_budget_bytes) // bytes_per_px // 128) * 128)
    sp_tile = pl.cdiv(n_sp, 128) * 128       # never bigger than the problem
    tile = min(tn, budget_tile, sp_tile)
    n_pad = pl.cdiv(n_sp, tile) * tile

    # NCHW is contiguous as (b, cin, w*h): zero-cost reshape, no transpose.
    x3 = x_nchw.reshape(b, cin, n_sp)
    if n_pad != n_sp:
        # Padded pixels are sliced off below before the final reshape.
        x3 = jnp.pad(x3, ((0, 0), (0, 0), (0, n_pad - n_sp)))

    flops = b * n_pad * (2 * cin * 6 * hc_pad + 2 * hc_pad * cout + 10 * hc_pad)
    bytes_accessed = (b * n_pad * (cin + cout) * itemsize
                      + (we.size + be.size + wd.size + bd.size)
                      * jnp.dtype(we.dtype).itemsize)

    kernel = functools.partial(_hyptube_kernel, chain_dtype=chain_dtype)
    num_tiles = n_pad // tile

    out3 = pl.pallas_call(
        kernel,
        out_shape=jax.ShapeDtypeStruct((b, cout, n_pad), x_nchw.dtype),
        grid_spec=pltpu.PrefetchScalarGridSpec(
            num_scalar_prefetch=0,
            # Pixel axis first so the larger axis is the one megacore splits
            # across TensorCores on v7x (harmless on single-TC v5e/v6e).
            grid=(num_tiles, b),
            in_specs=[
                pl.BlockSpec((1, cin, tile), lambda si, bi: (bi, 0, si)),
                pl.BlockSpec((6 * hc_pad, cin), lambda si, bi: (0, 0)),
                pl.BlockSpec((6 * hc_pad, 1), lambda si, bi: (0, 0)),
                pl.BlockSpec((cout, hc_pad), lambda si, bi: (0, 0)),
                pl.BlockSpec((cout, 1), lambda si, bi: (0, 0)),
            ],
            out_specs=pl.BlockSpec((1, cout, tile), lambda si, bi: (bi, 0, si)),
        ),
        compiler_params=pltpu.CompilerParams(
            dimension_semantics=("parallel", "parallel"),
            # Big tiles overflow v5e's 16 MiB default scoped VMEM; 48 MiB is
            # still comfortably inside every generation's physical VMEM.
            vmem_limit_bytes=48 * 1024 * 1024),
        cost_estimate=pl.CostEstimate(
            flops=flops, transcendentals=0, bytes_accessed=bytes_accessed),
    )(x3, we, be, wd, bd)

    if n_pad != n_sp:
        out3 = out3[:, :, :n_sp]
    return out3.reshape(b, cout, w, h)


def hyptube_ref(x, w_enc, b_enc, w_dec, b_dec, hc):
    """Pure-JAX mirror of the PyTorch forward (NCHW)."""
    b, c, w, h = x.shape
    flow = jnp.einsum('oc,bcwh->bowh', w_enc, x) + b_enc[None, :, None, None]
    u, v = flow[:, :hc], flow[:, hc:2 * hc]
    f = flow[:, 2 * hc:].reshape(b, hc, 2, 2, w, h)
    out = jnp.zeros((b, hc, w, h), x.dtype)
    for ix in range(2):
        a = f[:, :, ix, 0]
        m = f[:, :, ix, 1]
        out = (out + a * u) * (1.0 + m * v)
    return jnp.einsum('oc,bcwh->bowh', w_dec, out) + b_dec[None, :, None, None]


if __name__ == "__main__":
    B, CIN, HC, COUT, W, H = 2, 4, 8, 4, 16, 16

    key = jax.random.PRNGKey(0)
    kx, k1, k2, k3, k4 = jax.random.split(key, 5)

    x = jax.random.normal(kx, (B, CIN, W, H), dtype=jnp.float32)
    # Parameter shapes from the module's __init__:
    #   enc: Linear(in_channels, 6*hidden) -> weight (6*hc, cin), bias (6*hc,)
    #   dec: Linear(hidden, out_channels)  -> weight (cout, hc), bias (cout,)
    w_enc = 0.2 * jax.random.normal(k1, (6 * HC, CIN), dtype=jnp.float32)
    b_enc = 0.1 * jax.random.normal(k2, (6 * HC,), dtype=jnp.float32)
    w_dec = 0.2 * jax.random.normal(k3, (COUT, HC), dtype=jnp.float32)
    b_dec = 0.1 * jax.random.normal(k4, (COUT,), dtype=jnp.float32)

    # One-time weight packing (hoisted off the launch path), then forward.
    packed = pack_hyptube_params(w_enc, b_enc, w_dec, b_dec, HC)
    y = hyptube_forward(x, packed)
    y = jax.block_until_ready(y)

    y_ref = hyptube_ref(x, w_enc, b_enc, w_dec, b_dec, HC)
    assert y.shape == (B, COUT, W, H)
    assert jnp.allclose(y, y_ref, atol=1e-4, rtol=1e-4), "mismatch vs reference"

    print("KERNEL_OK")
</pallas_src>

<mosaic_0001>
module attributes {stable_mosaic.version = 11 : i64} {
  func.func @_hyptube_kernel(%arg0: i32, %arg1: i32, %arg2: memref<1x4x256xf32, #tpu.memory_space<vmem>>, %arg3: memref<48x4xf32, #tpu.memory_space<vmem>>, %arg4: memref<48x1xf32, #tpu.memory_space<vmem>>, %arg5: memref<4x8xf32, #tpu.memory_space<vmem>>, %arg6: memref<4x1xf32, #tpu.memory_space<vmem>>, %arg7: memref<1x4x256xf32, #tpu.memory_space<vmem>>) attributes {dimension_semantics = [#tpu.dimension_semantics<parallel>, #tpu.dimension_semantics<parallel>], iteration_bounds = array<i64: 1, 2>, scalar_prefetch = 0 : i64, scratch_operands = 0 : i64, tpu.core_type = #tpu.core_type<tc>, window_params = [{transform_indices = @transform_0, window_bounds = array<i64: 1, 4, 256>}, {pipeline_mode = #tpu.pipeline_mode<synchronous>, transform_indices = @transform_1, window_bounds = array<i64: 48, 4>}, {pipeline_mode = #tpu.pipeline_mode<synchronous>, transform_indices = @transform_2, window_bounds = array<i64: 48, 1>}, {pipeline_mode = #tpu.pipeline_mode<synchronous>, transform_indices = @transform_3, window_bounds = array<i64: 4, 8>}, {pipeline_mode = #tpu.pipeline_mode<synchronous>, transform_indices = @transform_4, window_bounds = array<i64: 4, 1>}, {transform_indices = @transform_5, window_bounds = array<i64: 1, 4, 256>}]} {
    %c0 = arith.constant 0 : index
    %c0_0 = arith.constant 0 : index
    %c0_1 = arith.constant 0 : index
    %0 = vector.load %arg2[%c0, %c0_0, %c0_1] : memref<1x4x256xf32, #tpu.memory_space<vmem>>, vector<1x4x256xf32>
    %1 = vector.shape_cast %0 : vector<1x4x256xf32> to vector<4x256xf32>
    %c0_2 = arith.constant 0 : index
    %c0_3 = arith.constant 0 : index
    %2 = vector.load %arg3[%c0_2, %c0_3] : memref<48x4xf32, #tpu.memory_space<vmem>>, vector<48x4xf32>
    %cst = arith.constant dense<0.000000e+00> : vector<48x256xf32>
    %3 = tpu.matmul %2, %1, %cst {dimension_numbers = #tpu.dot_dimension_numbers<[1], [0], [0], [1], [0, 0, 1, 1], [], []>} : vector<48x4xf32>, vector<4x256xf32>, vector<48x256xf32> -> vector<48x256xf32>
    %c0_4 = arith.constant 0 : index
    %c0_5 = arith.constant 0 : index
    %4 = vector.load %arg4[%c0_4, %c0_5] : memref<48x1xf32, #tpu.memory_space<vmem>>, vector<48x1xf32>
    %5 = vector.broadcast %4 : vector<48x1xf32> to vector<48x256xf32>
    %6 = arith.addf %3, %5 : vector<48x256xf32>
    %7 = vector.extract_strided_slice %6 {offsets = [0, 0], sizes = [8, 256], strides = [1, 1]} : vector<48x256xf32> to vector<8x256xf32>
    %8 = vector.extract_strided_slice %6 {offsets = [8, 0], sizes = [8, 256], strides = [1, 1]} : vector<48x256xf32> to vector<8x256xf32>
    %9 = vector.extract_strided_slice %6 {offsets = [16, 0], sizes = [8, 256], strides = [1, 1]} : vector<48x256xf32> to vector<8x256xf32>
    %10 = vector.extract_strided_slice %6 {offsets = [24, 0], sizes = [8, 256], strides = [1, 1]} : vector<48x256xf32> to vector<8x256xf32>
    %11 = vector.extract_strided_slice %6 {offsets = [32, 0], sizes = [8, 256], strides = [1, 1]} : vector<48x256xf32> to vector<8x256xf32>
    %12 = vector.extract_strided_slice %6 {offsets = [40, 0], sizes = [8, 256], strides = [1, 1]} : vector<48x256xf32> to vector<8x256xf32>
    %13 = arith.mulf %9, %7 : vector<8x256xf32>
    %14 = arith.mulf %10, %8 : vector<8x256xf32>
    %cst_6 = arith.constant 1.000000e+00 : f32
    %15 = vector.broadcast %cst_6 : f32 to vector<8x256xf32>
    %16 = arith.addf %15, %14 : vector<8x256xf32>
    %17 = arith.mulf %13, %16 : vector<8x256xf32>
    %18 = arith.mulf %11, %7 : vector<8x256xf32>
    %19 = arith.addf %17, %18 : vector<8x256xf32>
    %20 = arith.mulf %12, %8 : vector<8x256xf32>
    %cst_7 = arith.constant 1.000000e+00 : f32
    %21 = vector.broadcast %cst_7 : f32 to vector<8x256xf32>
    %22 = arith.addf %21, %20 : vector<8x256xf32>
    %23 = arith.mulf %19, %22 : vector<8x256xf32>
    %c0_8 = arith.constant 0 : index
    %c0_9 = arith.constant 0 : index
    %24 = vector.load %arg5[%c0_8, %c0_9] : memref<4x8xf32, #tpu.memory_space<vmem>>, vector<4x8xf32>
    %cst_10 = arith.constant dense<0.000000e+00> : vector<4x256xf32>
    %25 = tpu.matmul %24, %23, %cst_10 {dimension_numbers = #tpu.dot_dimension_numbers<[1], [0], [0], [1], [0, 0, 1, 1], [], []>} : vector<4x8xf32>, vector<8x256xf32>, vector<4x256xf32> -> vector<4x256xf32>
    %c0_11 = arith.constant 0 : index
    %c0_12 = arith.constant 0 : index
    %26 = vector.load %arg6[%c0_11, %c0_12] : memref<4x1xf32, #tpu.memory_space<vmem>>, vector<4x1xf32>
    %27 = vector.broadcast %26 : vector<4x1xf32> to vector<4x256xf32>
    %28 = arith.addf %25, %27 : vector<4x256xf32>
    %c0_13 = arith.constant 0 : index
    %c0_14 = arith.constant 0 : index
    %c0_15 = arith.constant 0 : index
    %29 = vector.load %arg7[%c0_13, %c0_14, %c0_15] : memref<1x4x256xf32, #tpu.memory_space<vmem>>, vector<1x4x256xf32>
    %30 = vector.shape_cast %29 : vector<1x4x256xf32> to vector<4x256xf32>
    %31 = vector.shape_cast %28 : vector<4x256xf32> to vector<1x4x256xf32>
    tpu.vector_store %arg7[%c0_13, %c0_14, %c0_15], %31 {strides = array<i32>} : memref<1x4x256xf32, #tpu.memory_space<vmem>>, vector<1x4x256xf32>,
    return
  }
  func.func @transform_0(%arg0: i32, %arg1: i32) -> (i32, i32, i32) {
    %c0_i32 = arith.constant 0 : i32
    %c0_i32_0 = arith.constant 0 : i32
    return %arg1, %c0_i32, %arg0 : i32, i32, i32
  }
  func.func @transform_1(%arg0: i32, %arg1: i32) -> (i32, i32) {
    %c0_i32 = arith.constant 0 : i32
    %c0_i32_0 = arith.constant 0 : i32
    %c0_i32_1 = arith.constant 0 : i32
    return %c0_i32, %c0_i32_0 : i32, i32
  }
  func.func @transform_2(%arg0: i32, %arg1: i32) -> (i32, i32) {
    %c0_i32 = arith.constant 0 : i32
    %c0_i32_0 = arith.constant 0 : i32
    %c0_i32_1 = arith.constant 0 : i32
    return %c0_i32, %c0_i32_0 : i32, i32
  }
  func.func @transform_3(%arg0: i32, %arg1: i32) -> (i32, i32) {
    %c0_i32 = arith.constant 0 : i32
    %c0_i32_0 = arith.constant 0 : i32
    %c0_i32_1 = arith.constant 0 : i32
    return %c0_i32, %c0_i32_0 : i32, i32
  }
  func.func @transform_4(%arg0: i32, %arg1: i32) -> (i32, i32) {
    %c0_i32 = arith.constant 0 : i32
    %c0_i32_0 = arith.constant 0 : i32
    %c0_i32_1 = arith.constant 0 : i32
    return %c0_i32, %c0_i32_0 : i32, i32
  }
  func.func @transform_5(%arg0: i32, %arg1: i32) -> (i32, i32, i32) {
    %c0_i32 = arith.constant 0 : i32
    %c0_i32_0 = arith.constant 0 : i32
    return %arg1, %c0_i32, %arg0 : i32, i32, i32
  }
}

</mosaic_0001>

<bundles_post_ra>
// kernel: tpu_custom_call.1
= control target key start
LH: loop header
LB: loop body
LE: loop exit
PB: predicated region body
PF: predicated region fallthrough
CT: control target
= control target key end

     0   :  { %10 = vsyncpa [#allocation3], 0  ;;  %s981_s0 = inlined_call_operand.vmem [shape: f32[2,4,256], index: 0, kind: input, shape index: {}]   ;;  %s982_s1 = inlined_call_operand.vmem [shape: f32[48,4], index: 1, kind: input, shape index: {}]   ;;  %s983_s2 = inlined_call_operand.vmem [shape: f32[48,1], index: 2, kind: input, shape index: {}]   ;;  %s984_s3 = inlined_call_operand.vmem [shape: f32[4,8], index: 3, kind: input, shape index: {}]   ;;  %s985_s4 = inlined_call_operand.vmem [shape: f32[4,1], index: 4, kind: input, shape index: {}]   ;;  %s986_s5 = inlined_call_operand.hbm [shape: f32[2,4,256], index: 5, kind: output, shape index: {}]  }
   0x1   :  { %12 = vsyncpa [#allocation3 + $0x1], 0  ;;  %s821_s18 = smov 0   ;;  %s823_s19 = smov 0  }
   0x2   :  { %s825_s20 = smov 0   ;;  %s827_s21 = smov 0  }
   0x3   :  { %s829_s22 = smov 0   ;;  %s831_s23 = smov 0  }
   0x4 LB: > { %s622_s24 = sadd.s32 4294967295, %s786_s23   ;;  %s623_s25 = sadd.s32 4294967294, %s786_s23   ;;  %s786_s23 = sphi %s831_s23, %s18_s23   ;;  %s782_s22 = sphi %s829_s22, %s993_s22   ;;  %s778_s21 = sphi %s827_s21, %s992_s21   ;;  %s774_s20 = sphi %s825_s20, %s991_s20   ;;  %s770_s19 = sphi %s823_s19, %s990_s19   ;;  %s766_s18 = sphi %s821_s18, %s989_s18  }
   0x5   : > { %s27_s26 = sadd.s32 1, %s782_s22  ;;  %s151_s27 = sadd.s32 1, %s774_s20 }
   0x6   : > { %p28_p0 = scmp.ge.s32.totalorder %s27_s26, 2  ;;  %p161_p1 = scmp.ne.s32.totalorder %s774_s20, %s770_s19 }
   0x7   : > { %p162_p2 = scmp.eq.s32.totalorder %s622_s24, 1  ;;  %p167_p3 = scmp.ne.s32.totalorder %s770_s19, %s766_s18 }
   0x8   : > { %s995_s26 = smov (%p28_p0, %s27_s26), 0  ;;  %p168_p5 = scmp.eq.s32.totalorder %s623_s25, 1 }
   0x9   : > { %p861_p4 = por %p162_p2, %p161_p1  ;;  %s146_s29 = ssub.s32 %s782_s22, %s995_s26 }
   0xa   : > { %p626_p6 = scmp.ge.s32.totalorder %s786_s23, 1  ;;  %p149_p7 = scmp.eq.s32.totalorder %s146_s29, 0 }
   0xb   : > { %p868_p8 = por %p168_p5, %p167_p3  ;;  %p211_p9 = scmp.lt.s32.totalorder %s786_s23, 3 }
   0xc   : > { %s874_s6 = scalar_select %p149_p7, %s774_s20, %s151_s27  }
   0xd   : > { %p212_p10 = pnand %p626_p6, %p211_p9 }
   0xe   : > { %p244_p11 = scmp.lt.s32.totalorder (!%p212_p10), %s778_s21, 1  ;;  %v788_v0 = vmov (!%p212_p10), 0.0   ;;  %v789_v1 = vmov (!%p212_p10), 0   ;;  %v262_v2 = vld [vmem:[%s983_s2 + $0x8] sm:$0xff] (!%p212_p10)  ;;  %v261_v3 = vld [vmem:[%s983_s2] sm:$0xff] (!%p212_p10)  ;;  %v264_v4 = vld [vmem:[%s983_s2 + $0x18] sm:$0xff] (!%p212_p10) }
   0xf   : > { %215 = sbr.rel (%p212_p10) target bundleno = 501 (0x1f5), region = 40  ;;  %387 = vmatprep.mubr.f32.mxu0 (!%p212_p10), %v788_v0  ;;  %411 = vmatprep.mubr.f32.mxu1 (!%p212_p10), %v788_v0  ;;  %v263_v5 = vld [vmem:[%s983_s2 + $0x10] sm:$0xff] (!%p212_p10)  ;;  %vm318_vm0 = vcmask (!%p212_p10), 1043456   ;;  %v255_v8 = vld [vmem:[%s982_s1] sm:$0xff] (!%p212_p10)  ;;  %vm299_vm1 = vcmask (!%p212_p10), 31744   ;;  %v266_v11 = vld [vmem:[%s983_s2 + $0x28] sm:$0xff] (!%p212_p10) }
  0x10   : > { %705 = vset.pattern.permute.xlu0 (!%p212_p10), %v789_v1  ;;  %706 = vset.pattern.permute.xlu1 (!%p212_p10), %v789_v1  ;;  %v259_v9 = vld [vmem:[%s982_s1 + $0x20] sm:$0xff] (!%p212_p10)  ;;  %v256_v12 = vld [vmem:[%s982_s1 + $0x8] sm:$0xff] (!%p212_p10)  ;;  %v257_v15 = vld [vmem:[%s982_s1 + $0x10] sm:$0xff] (!%p212_p10)  ;;  %vm449_vm2 = vcmask (!%p212_p10), 64512   ;;  %s240_s10 = sand.u32 (!%p212_p10), 1, %s770_s19  }
  0x11   : > { %274 = vperm.xlu0 (!%p212_p10), %705, %v262_v2   ;;  %269 = vperm.xlu1 (!%p212_p10), %706, %v261_v3   ;;  %v265_v10 = vld [vmem:[%s983_s2 + $0x20] sm:$0xff] (!%p212_p10)  ;;  %v260_v13 = vld [vmem:[%s982_s1 + $0x28] sm:$0xff] (!%p212_p10)  ;;  %v258_v16 = vld [vmem:[%s982_s1 + $0x18] sm:$0xff] (!%p212_p10)  ;;  %s627_s11 = sshll.u32 (!%p212_p10), %s240_s10, 3  ;;  %s530_s24 = scalar_lea.sflag (!%p212_p10), [#allocation3], %s240_s10 }
  0x12   : > { %v443_v14 = vld [vmem:[%s985_s4] sm:$0xf] (!%p212_p10)  ;;  %s242_s13 = scalar_lea.vmem (!%p212_p10), [#allocation2], %s627_s11 }
  0x13   : > { %v442_v1 = vld [vmem:[%s984_s3] sm:$0xf] (!%p212_p10)  ;;  %s546_s14 = sshll.u32 (!%p212_p10), %s242_s13, 4  ;;  %s936_s14 = int_to_ptr.vmem [resolvable:$true] %s546_s14 }
  0x14   : > { %s708_s25 = scalar_lea.vmem (!%p212_p10), %s936_s14, 128 }
  0x15   : > { %284 = vperm.xlu0 (!%p212_p10), %705, %v264_v4   ;;  %279 = vperm.xlu1 (!%p212_p10), %706, %v263_v5   ;;  %p709_p12 = scmp.ne.s32.totalorder (!%p212_p10), %s936_s14, %s708_s25 }
  0x16   : > { %s245_s7 = scalar_select %p244_p11, %s778_s21, 1 }
  0x17   : > { %p710_p13 = pnand %p709_p12, %p861_p4 }
  0x18   : > { %s644_s12 = sshll.u32 %s245_s7, 3 }
  0x19   : > { %s251_s17 = scalar_lea.vmem %s981_s0, %s644_s12  ;;  %289 = vperm.xlu0 %705, %v265_v10   ;;  %294 = vperm.xlu1 %706, %v266_v11   ;;  %s645_s12 = sshll.u32 %s778_s21, 7 }
  0x1a   : > { %v254_v6 = vld [vmem:[%s251_s17] sm:$0xff]  ;;  %s934_s17 = scalar_lea.hbm %s986_s5, %s645_s12  ;;  %p711_p0 = pneg %p710_p13 }
  0x1b   : > { %v298_v7 = vcombine.high %v254_v6, %v254_v6  ;;  %s790_s21 = smov [#allocation2]  }
  0x1c   : > { %s712_s27 = sshll.u32 %s790_s21, 4  ;;  %s713_s27 = int_to_ptr.vmem [resolvable:$false] %s712_s27 }
  0x1d   : > { %630 = vmatprep.subr.msk.mxu0 %vm318_vm0, %v298_v7  ;;  %646 = vmatprep.subr.msk.mxu1 %vm318_vm0, %v298_v7  ;;  %s714_s29 = scalar_lea.vmem %s713_s27, 256  ;;  %p715_p1 = scmp.lt.s32.totalorder %s936_s14, %s713_s27 }
  0x1e   : > { %631 = vmatpush1.msk.msra.mxu0 %vm318_vm0, %v254_v6  ;;  %647 = vmatpush1.msk.msra.mxu1 %vm318_vm0, %v254_v6  ;;  %p716_p2 = scmp.lt.s32.totalorder %s714_s29, %s708_s25 }
  0x1f   : > { %632 = vmatmul.mubr.msk.f32.vlgmr.msra.gmra.mrb[0].mxu0 %vm299_vm1, %v255_v8  ;;  %636 = vmatmul.mubr.msk.f32.vlgmr.msra.gmra.mrb[0].mxu1 %vm299_vm1, %v259_v9 }
  0x20   : > { %393 = vmatprep.mubr.f32.mxu0 %v788_v0  ;;  %417 = vmatprep.mubr.f32.mxu1 %v788_v0  ;;  %p717_p3 = por %p716_p2, %p715_p1 }
  0x21   : > { %446 = vperm.xlu0 %705, %v443_v14  }
  0x22   : > { %p718_p5 = pnand %p717_p3, %p711_p0 }
  0x23   : > { %633 = vmatmul.mubr.msk.f32.gmra.mrb[2].mxu0 %vm299_vm1, %v256_v12  ;;  %637 = vmatmul.mubr.msk.f32.gmra.mrb[2].mxu1 %vm299_vm1, %v260_v13 }
  0x24   : > { %399 = vmatprep.mubr.f32.mxu0 %v788_v0  ;;  %517 = vmatprep.mubr.f32.mxu1 %v788_v0 }
  0x27   : > { %634 = vmatmul.mubr.msk.f32.gmra.mrb[4].mxu0 %vm299_vm1, %v257_v15 }
  0x28   : > { %405 = vmatprep.mubr.f32.mxu0 %v788_v0 }
  0x2b   : > { %635 = vmatmul.mubr.msk.f32.gmra.mrb[6].mxu0 %vm299_vm1, %v258_v16 }
  0x90   : > { %v275_v17 = vpop.permute.xlu0 %274  ;;  %v270_v18 = vpop.permute.xlu1 %269 }
  0x94   : > { %v285_v19 = vpop.permute.xlu0 %284  ;;  %v280_v20 = vpop.permute.xlu1 %279 }
  0x98   : > { %v290_v21 = vpop.permute.xlu0 %289  ;;  %v295_v30 = vpop.permute.xlu1 %294 }
  0xa0   : > { %v447_v2 = vpop.permute.xlu0 %446 }
  0xf2   : > { %v389_v22 = vpop.f32.mrb[0].mxu0  ;;  %v413_v23 = vpop.f32.mrb[0].mxu1 }
  0xf3   : > { %v390_v24 = vadd.f32 %v389_v22, %v270_v18  ;;  %v414_v25 = vadd.f32 %v413_v23, %v290_v21  ;;  %v391_v26 = vpop.f32.mrb[1].mxu0  ;;  %v415_v27 = vpop.f32.mrb[1].mxu1 }
  0xf4   : > { %v392_v28 = vadd.f32 %v391_v26, %v270_v18  ;;  %v416_v29 = vadd.f32 %v415_v27, %v290_v21 }
  0xf5   : > { %v432_v31 = vmul.f32 %v414_v25, %v390_v24 }
  0xf6   : > { %v433_v32 = vmul.f32 %v416_v29, %v392_v28  ;;  %v395_v33 = vpop.f32.mrb[2].mxu0  ;;  %v419_v34 = vpop.f32.mrb[2].mxu1 }
  0xf7   : > { %v396_v35 = vadd.f32 %v395_v33, %v275_v17  ;;  %v420_v36 = vadd.f32 %v419_v34, %v295_v30  ;;  %v397_v37 = vpop.f32.mrb[3].mxu0  ;;  %v421_v38 = vpop.f32.mrb[3].mxu1 }
  0xf8   : > { %v398_v39 = vadd.f32 %v397_v37, %v275_v17  ;;  %v422_v40 = vadd.f32 %v421_v38, %v295_v30 }
  0xf9   : > { %v436_v41 = vmul.f32 %v420_v36, %v396_v35 }
  0xfa   : > { %v437_v42 = vmul.f32 %v422_v40, %v398_v39  ;;  %v401_v43 = vpop.f32.mrb[4].mxu0 }
  0xfb   : > { %v402_v44 = vadd.f32 %v401_v43, %v280_v20  ;;  %v403_v45 = vpop.f32.mrb[5].mxu0  ;;  %v438_v59 = vadd.f32 1.0, %v436_v41 }
  0xfc   : > { %v404_v46 = vadd.f32 %v403_v45, %v280_v20  ;;  %v439_v61 = vadd.f32 1.0, %v437_v42 }
  0xfd   : > { %v424_v47 = vmul.f32 %v402_v44, %v390_v24 }
  0xfe   : > { %v425_v48 = vmul.f32 %v404_v46, %v392_v28  ;;  %v407_v49 = vpop.f32.mrb[6].mxu0 }
  0xff   : > { %v408_v50 = vadd.f32 %v407_v49, %v285_v19  ;;  %v409_v51 = vpop.f32.mrb[7].mxu0 }
 0x100   : > { %v410_v52 = vadd.f32 %v409_v51, %v285_v19 }
 0x101   : > { %v426_v53 = vmul.f32 %v408_v50, %v396_v35 }
 0x102   : > { %v427_v54 = vmul.f32 %v410_v52, %v398_v39 }
 0x103   : > { %v428_v55 = vadd.f32 1.0, %v426_v53 }
 0x104   : > { %v429_v56 = vadd.f32 1.0, %v427_v54 }
 0x105   : > { %v430_v57 = vmul.f32 %v428_v55, %v424_v47 }
 0x106   : > { %v431_v58 = vmul.f32 %v429_v56, %v425_v48 }
 0x107   : > { %v434_v60 = vadd.f32 %v432_v31, %v430_v57 }
 0x108   : > { %v435_v62 = vadd.f32 %v433_v32, %v431_v58 }
 0x109   : > { %v440_v63 = vmul.f32 %v438_v59, %v434_v60 }
 0x10a   : > { %v441_v0 = vmul.f32 %v439_v61, %v435_v62 }
 0x10c   : > { %453 = vmatprep.subr.mxu1 %v441_v0 }
 0x10d   : > { %454 = vmatpush1.msra.mxu1 %v440_v63 }
 0x10e   : > { %638 = vmatmul.mubr.msk.f32.vlgmr.msra.gmra.mrb[4].mxu1 %vm449_vm2, %v442_v1 }
 0x1e1   : > { %v519_v3 = vpop.f32.mrb[4].mxu1 }
 0x1e2   : > { %v520_v4 = vadd.f32 %v519_v3, %v447_v2  ;;  %v521_v5 = vpop.f32.mrb[5].mxu1 }
 0x1e3   : > { %v522_v6 = vadd.f32 %v521_v5, %v447_v2 }
 0x1e5   : > { %v526_v7 = vcombine.low %v520_v4, %v522_v6 }
 0x1e7   : > { %528 = vst [vmem:[%s242_s13] sm:$0xff] %v526_v7 }
 0x1e8   : > { %721 = shalt.err (!%p718_p5)
}
 0x1e9   : > { %s722_s7 = scalar_lea.hbm %s934_s17, 128  ;;  %s726_s10 = scalar_lea.hbm %s986_s5, 256 }
 0x1ea   : > { %p723_p6 = scmp.ne.s32.totalorder %s934_s17, %s722_s7  ;;  %p727_p10 = scmp.lt.u32.totalorder %s934_s17, %s986_s5 }
 0x1eb   : > { %p728_p11 = scmp.lt.u32.totalorder %s726_s10, %s722_s7  ;;  %p730_p13 = scmp.lt.u32.totalorder %s722_s7, %s934_s17 }
 0x1ec   : > { %p724_p7 = pnand %p723_p6, %p861_p4 }
 0x1ed   : > { %p729_p12 = por %p728_p11, %p727_p10 }
 0x1ee   : > { %p725_p9 = pneg %p724_p7 }
 0x1ef   : > { %p731_p0 = por %p730_p13, %p729_p12 }
 0x1f1   : > { %p732_p1 = pnand %p731_p0, %p725_p9 }
 0x1f3   : > { %735 = shalt.err (!%p732_p1)
}
 0x1f4   : > { %648 = dma.vmem_to_hbm [thread:$0]  (%p861_p4), %s936_s14, 128, %s934_s17, %s530_s24  }
 0x1f5 PF: > { %p654_p2 = scmp.ge.s32.totalorder %s786_s23, 2  ;;  %s558_s13 = sand.u32 1, %s766_s18  }
 0x1f6   : > { %s559_s15 = scalar_lea.sflag [#allocation3], %s558_s13 }
 0x1f7   : > { %p651_p3 = pnand %p654_p2, %p868_p8 }
 0x1f9   : > { %761 = dma.done.wait (!%p651_p3), %s559_s15, 128  }
 0x1fa   : > { %763 = vsyncadd (!%p651_p3), %s559_s15, 4294967168  ;;  %s18_s23 = sadd.s32 1, %s786_s23   ;;  %s989_s18 = smov %s770_s19 }
 0x1fb   : > { %p15_p5 = scmp.ge.s32.totalorder %s18_s23, 4   ;;  %s990_s19 = smov %s774_s20 }
 0x1fc   : > { %s991_s20 = smov %s874_s6  ;;  %s992_s21 = smov %s782_s22 }
 0x1fd   : > { %s993_s22 = smov %s995_s26  ;;  %17 = sbr.rel (!%p15_p5) target bundleno = 4 (0x4), region = 75 }
 0x204   :  { %564 = vsyncpa [#allocation3], 1 }
 0x205   :  { %566 = vsyncpa [#allocation3 + $0x1], 1 }

</bundles_post_ra>
